<compile_context>
chip_gen: v6e
topology: v6e:2x2x1
jax: 0.10.0
libtpu: 0.0.40
codegen_flags: <defaults>
</compile_context>

<pallas_src>
import functools

import jax
import jax.numpy as jnp
from jax.experimental import pallas as pl
from jax.experimental.pallas import tpu as pltpu


def _round_up(x, m):
    return ((x + m - 1) // m) * m


def _pick_tiles(n):
    """Return (n_pad, tm, tk): padded N, row tile, reduction tile (tm % tk == 0)."""
    if n > 512:
        # Large graphs: big row tiles cut redundant feat streaming, 256-wide
        # reduction tiles keep the adj DMA pipelined.
        n_pad = _round_up(n, 512)
        return n_pad, 512, 256
    if n > 128:
        # Medium graphs: two row tiles so the "parallel" axis can use both
        # TensorCores on v7x.
        n_pad = _round_up(n, 256)
        return n_pad, n_pad // 2, 128
    # Tiny graphs: a single 128x128 block.
    return 128, 128, 128


def _block_bytes(rows, cols, itemsize):
    return _round_up(rows, 8) * _round_up(cols, 128) * itemsize


def _gcn_agg_kernel(adj_ref, xk_ref, si_ref, o_ref, acc_ref, *, tm, tk):
    """acc_i = feat_i + sum_k adj[i,k] @ feat_k ; out_i = s_i * acc_i.

    feat is already scaled by d^-1/2 outside the kernel, so the self-loop
    (identity) term is simply the feat rows that fall inside this row tile.
    """
    i = pl.program_id(0)
    k = pl.program_id(1)

    @pl.when(k == 0)
    def _():
        acc_ref[...] = jnp.zeros_like(acc_ref)

    # Neighbor aggregation: bf16 x bf16 on the MXU, f32 accumulation.
    acc_ref[...] += jnp.dot(adj_ref[...], xk_ref[...],
                            preferred_element_type=jnp.float32)

    # Self-loop contribution: if this k-tile of feat rows lies inside the
    # current i row tile, add it to the matching accumulator rows.
    off = k * tk - i * tm
    @pl.when(jnp.logical_and(off >= 0, off < tm))
    def _():
        o = pl.multiple_of(off, tk)           # tm % tk == 0 -> off is aligned
        acc_ref[pl.ds(o, tk), :] += xk_ref[...].astype(jnp.float32)

    @pl.when(k == pl.num_programs(1) - 1)
    def _():
        o_ref[...] = (si_ref[...] * acc_ref[...]).astype(o_ref.dtype)


def gcn_layer(x, adj, weight):
    """x: [N, F_in], adj: [N, N], weight: [F_out, F_in] (torch nn.Linear layout)."""
    n, f_in = x.shape
    f_out = weight.shape[0]

    # adj in bf16 (exact for 0/1 adjacency): halves the O(N^2) HBM traffic and
    # feeds the native bf16 MXU path. The degree row-sum reuses the same bf16
    # copy with f32 accumulation (exact for integer degrees).
    adj_bf = adj.astype(jnp.bfloat16)
    deg = jnp.sum(adj_bf, axis=1, dtype=jnp.float32).reshape(n, 1)
    s = jax.lax.rsqrt(deg + jnp.float32(1.0))          # d >= 1, single EUP op

    # Contraction-order choice: run the dense linear in XLA on whichever side
    # keeps the feature width through the O(N^2) aggregation smaller. The
    # kernel never holds W resident.
    fold_weight = f_out <= f_in
    if fold_weight:
        feat = jnp.dot(x.astype(jnp.float32), weight.astype(jnp.float32).T,
                       preferred_element_type=jnp.float32)         # (N, F_out)
    else:
        feat = x.astype(jnp.float32)                                # (N, F_in)

    # Pre-scale by d^-1/2 once (removes the per-step broadcast multiply and
    # the dk stream from the kernel) and drop to bf16 for the MXU.
    feat = (s * feat).astype(jnp.bfloat16)
    f_feat = feat.shape[1]
    f_pad = _round_up(f_feat, 128)                      # lane-dense output

    n_pad, tm, tk = _pick_tiles(n)
    assert tm % tk == 0 and n_pad % tm == 0 and n_pad % tk == 0

    # Zero padding: padded adj rows/cols and feat rows are zero, so padded
    # output rows are zero and real rows are unaffected (sliced off below).
    adj_bf = jnp.pad(adj_bf, ((0, n_pad - n), (0, n_pad - n)))
    feat = jnp.pad(feat, ((0, n_pad - n), (0, f_pad - f_feat)))
    s = jnp.pad(s, ((0, n_pad - n), (0, 0)), constant_values=1.0)

    grid = (n_pad // tm, n_pad // tk)

    in_specs = [
        pl.BlockSpec((tm, tk), lambda i, k: (i, k)),     # adj tile (bf16)
        pl.BlockSpec((tk, f_pad), lambda i, k: (k, 0)),  # pre-scaled feat rows
        pl.BlockSpec((tm, 1), lambda i, k: (i, 0)),      # d^-1/2 for row tile
    ]
    out_specs = pl.BlockSpec((tm, f_pad), lambda i, k: (i, 0))

    # VMEM: double-buffered blocks + f32 accumulator; capped below v7x's
    # 64 MiB physical VMEM, no extra multiplier on top.
    need = (2 * _block_bytes(tm, tk, 2)          # adj, bf16
            + 2 * _block_bytes(tk, f_pad, 2)     # feat k-stream, bf16
            + 2 * _block_bytes(tm, 1, 4)         # scale
            + 2 * _block_bytes(tm, f_pad, 4)     # output, f32
            + _block_bytes(tm, f_pad, 4))        # accumulator scratch
    vmem_limit = int(min(56 << 20, max(16 << 20, need + (4 << 20))))

    grid_i = n_pad // tm
    flops = 2 * n_pad * n_pad * f_pad
    bytes_accessed = (2 * n_pad * n_pad              # adj read (bf16)
                      + 2 * grid_i * n_pad * f_pad   # feat streamed per row pass
                      + 4 * n_pad * f_pad            # output write (f32)
                      + 4 * n_pad)                   # scale

    agg = pl.pallas_call(
        functools.partial(_gcn_agg_kernel, tm=tm, tk=tk),
        out_shape=jax.ShapeDtypeStruct((n_pad, f_pad), jnp.float32),
        grid_spec=pltpu.PrefetchScalarGridSpec(
            num_scalar_prefetch=0,
            grid=grid,
            in_specs=in_specs,
            out_specs=out_specs,
            scratch_shapes=[pltpu.VMEM((tm, f_pad), jnp.float32)],
        ),
        compiler_params=pltpu.CompilerParams(
            dimension_semantics=("parallel", "arbitrary"),
            vmem_limit_bytes=vmem_limit,
        ),
        cost_estimate=pl.CostEstimate(
            flops=int(flops), transcendentals=0,
            bytes_accessed=int(bytes_accessed)),
    )(adj_bf, feat, s)

    agg = agg[:n, :f_feat]
    if fold_weight:
        return agg
    # Dense linear applied in XLA (already near roofline there); keeps the
    # kernel free of a resident, double-buffered weight block.
    return jnp.dot(agg, weight.astype(jnp.float32).T,
                   preferred_element_type=jnp.float32)


def reference_gcn(x, adj, weight):
    """Pure-JAX f32 reference mirroring the PyTorch forward exactly."""
    n = adj.shape[0]
    a_hat = jnp.eye(n, dtype=jnp.float32) + adj.astype(jnp.float32)
    d = jnp.sum(a_hat, axis=1) ** -0.5
    a_prime = jnp.diag(d) @ a_hat @ jnp.diag(d)
    return (a_prime @ x.astype(jnp.float32)) @ weight.astype(jnp.float32).T


if __name__ == "__main__":
    key = jax.random.PRNGKey(0)

    def make_case(case_key, n, f_in, f_out):
        k_adj, k_x, k_w = jax.random.split(case_key, 3)
        upper = jax.random.bernoulli(k_adj, p=0.4, shape=(n, n)).astype(jnp.float32)
        adj = jnp.triu(upper, k=1)
        adj = adj + adj.T                    # symmetric 0/1, no self loops
        x = jax.random.normal(k_x, (n, f_in), dtype=jnp.float32)
        bound = 1.0 / (f_in ** 0.5)
        weight = jax.random.uniform(k_w, (f_out, f_in), dtype=jnp.float32,
                                    minval=-bound, maxval=bound)
        return x, adj, weight

    cases = [
        (8, 16, 32),     # assignment-scale; padded into one 128-row block
        (300, 48, 96),   # ragged N -> padded; aggregation over raw X, W in XLA
        (512, 128, 64),  # weight folded; grid (2, 4): two parallel row tiles
        (1024, 96, 32),  # rectangular TM=512 / TK=256 tiles
    ]
    keys = jax.random.split(key, len(cases))
    for case_key, (n, f_in, f_out) in zip(keys, cases):
        x, adj, weight = make_case(case_key, n, f_in, f_out)
        out = jax.block_until_ready(gcn_layer(x, adj, weight))
        ref = reference_gcn(x, adj, weight)
        assert out.shape == (n, f_out)
        err = float(jnp.max(jnp.abs(out - ref)))
        scale = float(jnp.max(jnp.abs(ref))) + 1e-30
        # bf16 feature path inside the aggregation -> relative tolerance.
        assert err <= 2e-2 * scale, (
            f"mismatch for N={n}, F_in={f_in}, F_out={f_out}: "
            f"max abs err {err}, rel {err / scale}")

    print("KERNEL_OK")
</pallas_src>

<mosaic_0001>
module attributes {stable_mosaic.version = 11 : i64} {
  func.func @_gcn_agg_kernel(%arg0: i32, %arg1: i32, %arg2: memref<128x128xbf16, #tpu.memory_space<vmem>>, %arg3: memref<128x128xbf16, #tpu.memory_space<vmem>>, %arg4: memref<128x1xf32, #tpu.memory_space<vmem>>, %arg5: memref<128x128xf32, #tpu.memory_space<vmem>>, %arg6: memref<128x128xf32, #tpu.memory_space<vmem>>) attributes {dimension_semantics = [#tpu.dimension_semantics<parallel>, #tpu.dimension_semantics<arbitrary>], iteration_bounds = array<i64: 1, 1>, scalar_prefetch = 0 : i64, scratch_operands = 1 : i64, tpu.core_type = #tpu.core_type<tc>, window_params = [{transform_indices = @transform_0, window_bounds = array<i64: 128, 128>}, {transform_indices = @transform_1, window_bounds = array<i64: 128, 128>}, {transform_indices = @transform_2, window_bounds = array<i64: 128, 1>}, {transform_indices = @transform_3, window_bounds = array<i64: 128, 128>}]} {
    %c0_i32 = arith.constant 0 : i32
    %0 = arith.cmpi eq, %arg1, %c0_i32 : i32
    %1 = arith.extui %0 : i1 to i32
    %c0_i32_0 = arith.constant 0 : i32
    %2 = arith.cmpi ne, %1, %c0_i32_0 : i32
    scf.if %2 {
      %cst_14 = arith.constant 0.000000e+00 : f32
      %20 = vector.broadcast %cst_14 : f32 to vector<128x128xf32>
      %c0_15 = arith.constant 0 : index
      %c0_16 = arith.constant 0 : index
      %21 = vector.load %arg6[%c0_15, %c0_16] : memref<128x128xf32, #tpu.memory_space<vmem>>, vector<128x128xf32>
      tpu.vector_store %arg6[%c0_15, %c0_16], %20 {strides = array<i32>} : memref<128x128xf32, #tpu.memory_space<vmem>>, vector<128x128xf32>,
    } else {
    }
    %c0 = arith.constant 0 : index
    %c0_1 = arith.constant 0 : index
    %3 = vector.load %arg6[%c0, %c0_1] : memref<128x128xf32, #tpu.memory_space<vmem>>, vector<128x128xf32>
    %c0_2 = arith.constant 0 : index
    %c0_3 = arith.constant 0 : index
    %4 = vector.load %arg2[%c0_2, %c0_3] : memref<128x128xbf16, #tpu.memory_space<vmem>>, vector<128x128xbf16>
    %c0_4 = arith.constant 0 : index
    %c0_5 = arith.constant 0 : index
    %5 = vector.load %arg3[%c0_4, %c0_5] : memref<128x128xbf16, #tpu.memory_space<vmem>>, vector<128x128xbf16>
    %cst = arith.constant dense<0.000000e+00> : vector<128x128xf32>
    %6 = tpu.matmul %4, %5, %cst {dimension_numbers = #tpu.dot_dimension_numbers<[1], [0], [0], [1], [0, 0, 1, 1], [], []>} : vector<128x128xbf16>, vector<128x128xbf16>, vector<128x128xf32> -> vector<128x128xf32>
    %7 = arith.addf %3, %6 : vector<128x128xf32>
    %c0_6 = arith.constant 0 : index
    %c0_7 = arith.constant 0 : index
    %8 = vector.load %arg6[%c0_6, %c0_7] : memref<128x128xf32, #tpu.memory_space<vmem>>, vector<128x128xf32>
    tpu.vector_store %arg6[%c0_6, %c0_7], %7 {strides = array<i32>} : memref<128x128xf32, #tpu.memory_space<vmem>>, vector<128x128xf32>,
    %c128_i32 = arith.constant 128 : i32
    %9 = arith.muli %arg1, %c128_i32 : i32
    %c128_i32_8 = arith.constant 128 : i32
    %10 = arith.muli %arg0, %c128_i32_8 : i32
    %11 = arith.subi %9, %10 : i32
    %c0_i32_9 = arith.constant 0 : i32
    %12 = arith.cmpi sge, %11, %c0_i32_9 : i32
    %c128_i32_10 = arith.constant 128 : i32
    %13 = arith.cmpi slt, %11, %c128_i32_10 : i32
    %14 = arith.andi %12, %13 : i1
    %15 = arith.extui %14 : i1 to i32
    %c0_i32_11 = arith.constant 0 : i32
    %16 = arith.cmpi ne, %15, %c0_i32_11 : i32
    scf.if %16 {
      %20 = tpu.assume_multiple %11, 128 : i32
      %21 = arith.index_cast %20 : i32 to index
      %c0_14 = arith.constant 0 : index
      %22 = vector.load %arg6[%21, %c0_14] : memref<128x128xf32, #tpu.memory_space<vmem>>, vector<128x128xf32>
      %c0_15 = arith.constant 0 : index
      %c0_16 = arith.constant 0 : index
      %23 = vector.load %arg3[%c0_15, %c0_16] : memref<128x128xbf16, #tpu.memory_space<vmem>>, vector<128x128xbf16>
      %24 = arith.extf %23 : vector<128x128xbf16> to vector<128x128xf32>
      %25 = arith.addf %22, %24 : vector<128x128xf32>
      %26 = arith.index_cast %20 : i32 to index
      %c0_17 = arith.constant 0 : index
      %27 = vector.load %arg6[%26, %c0_17] : memref<128x128xf32, #tpu.memory_space<vmem>>, vector<128x128xf32>
      tpu.vector_store %arg6[%26, %c0_17], %25 {strides = array<i32>} : memref<128x128xf32, #tpu.memory_space<vmem>>, vector<128x128xf32>,
    } else {
    }
    %c0_i32_12 = arith.constant 0 : i32
    %17 = arith.cmpi eq, %arg1, %c0_i32_12 : i32
    %18 = arith.extui %17 : i1 to i32
    %c0_i32_13 = arith.constant 0 : i32
    %19 = arith.cmpi ne, %18, %c0_i32_13 : i32
    scf.if %19 {
      %c0_14 = arith.constant 0 : index
      %c0_15 = arith.constant 0 : index
      %20 = vector.load %arg4[%c0_14, %c0_15] : memref<128x1xf32, #tpu.memory_space<vmem>>, vector<128x1xf32>
      %c0_16 = arith.constant 0 : index
      %c0_17 = arith.constant 0 : index
      %21 = vector.load %arg6[%c0_16, %c0_17] : memref<128x128xf32, #tpu.memory_space<vmem>>, vector<128x128xf32>
      %22 = vector.broadcast %20 : vector<128x1xf32> to vector<128x128xf32>
      %23 = arith.mulf %22, %21 : vector<128x128xf32>
      %c0_18 = arith.constant 0 : index
      %c0_19 = arith.constant 0 : index
      %24 = vector.load %arg5[%c0_18, %c0_19] : memref<128x128xf32, #tpu.memory_space<vmem>>, vector<128x128xf32>
      tpu.vector_store %arg5[%c0_18, %c0_19], %23 {strides = array<i32>} : memref<128x128xf32, #tpu.memory_space<vmem>>, vector<128x128xf32>,
    } else {
    }
    return
  }
  func.func @transform_0(%arg0: i32, %arg1: i32) -> (i32, i32) {
    %c0_i32 = arith.constant 0 : i32
    return %arg0, %arg1 : i32, i32
  }
  func.func @transform_1(%arg0: i32, %arg1: i32) -> (i32, i32) {
    %c0_i32 = arith.constant 0 : i32
    %c0_i32_0 = arith.constant 0 : i32
    return %arg1, %c0_i32 : i32, i32
  }
  func.func @transform_2(%arg0: i32, %arg1: i32) -> (i32, i32) {
    %c0_i32 = arith.constant 0 : i32
    %c0_i32_0 = arith.constant 0 : i32
    return %arg0, %c0_i32 : i32, i32
  }
  func.func @transform_3(%arg0: i32, %arg1: i32) -> (i32, i32) {
    %c0_i32 = arith.constant 0 : i32
    %c0_i32_0 = arith.constant 0 : i32
    return %arg0, %c0_i32 : i32, i32
  }
}

</mosaic_0001>

<bundles_post_ra>
// kernel: tpu_custom_call.1
= control target key start
LH: loop header
LB: loop body
LE: loop exit
PB: predicated region body
PF: predicated region fallthrough
CT: control target
= control target key end

     0   :  { %v726_v2 = vmov 0   ;;  %s896_s0 = inlined_call_operand.vmem [shape: bf16[128,128], index: 0, kind: input, shape index: {}]   ;;  %s897_s1 = inlined_call_operand.vmem [shape: bf16[128,128], index: 1, kind: input, shape index: {}]   ;;  %s898_s2 = inlined_call_operand.vmem [shape: f32[128,1], index: 2, kind: input, shape index: {}]   ;;  %s899_s3 = inlined_call_operand.hbm [shape: f32[128,128], index: 3, kind: output, shape index: {}]  }
   0x1   :  { %v688_v0 = vld [vmem:[%s897_s1 + $0x38] sm:$0xff]   ;;  %v689_v1 = vld [vmem:[%s897_s1 + $0x30] sm:$0xff]   ;;  %687 = vset.pattern.permute.xlu1 %v726_v2  ;;  %686 = vset.pattern.permute.xlu0 %v726_v2  ;;  %v690_v3 = vld [vmem:[%s897_s1 + $0x28] sm:$0xff]  }
   0x2   :  { %634 = vmatprep.subr.bf16.mxu0 %v688_v0  ;;  %666 = vmatprep.subr.bf16.mxu1 %v688_v0  ;;  %v691_v4 = vld [vmem:[%s897_s1 + $0x20] sm:$0xff]   ;;  %v692_v7 = vld [vmem:[%s897_s1 + $0x18] sm:$0xff]   ;;  %v693_v8 = vld [vmem:[%s897_s1 + $0x10] sm:$0xff]  }
   0x3   :  { %635 = vmatpush3.bf16.msra.mxu0 %v688_v0  ;;  %674 = vmatpush3.bf16.msra.mxu1 %v688_v0  ;;  %v696_v5 = vld [vmem:[%s896_s0] sm:$0xff]   ;;  %v404_v9 = vld [vmem:[%s898_s2 + $0x10] sm:$0xff]  ;;  %v405_v11 = vld [vmem:[%s898_s2 + $0x18] sm:$0xff] }
   0x4   :  { %636 = vmatprep.subr.bf16.mxu0 %v689_v1  ;;  %667 = vmatprep.subr.bf16.mxu1 %v689_v1  ;;  %v697_v6 = vld [vmem:[%s896_s0 + $0x20] sm:$0xff]   ;;  %v403_v12 = vld [vmem:[%s898_s2 + $0x8] sm:$0xff] }
   0x5   :  { %650 = vmatprep.mubr.bf16.mxu0 %v696_v5  ;;  %658 = vmatprep.mubr.bf16.mxu1 %v697_v6  ;;  %v402_v10 = vld [vmem:[%s898_s2] sm:$0xff]  ;;  %v694_v13 = vld [vmem:[%s897_s1 + $0x8] sm:$0xff]  }
   0x6   :  { %446 = vperm.xlu1 %687, %v404_v9   ;;  %436 = vperm.xlu0 %686, %v402_v10  }
   0x7   :  { %637 = vmatpush3.bf16.msra.mxu0 %v689_v1  ;;  %675 = vmatpush3.bf16.msra.mxu1 %v689_v1 }
   0x8   :  { %638 = vmatprep.subr.bf16.mxu0 %v690_v3  ;;  %668 = vmatprep.subr.bf16.mxu1 %v690_v3 }
   0xa   :  { %451 = vperm.xlu1 %687, %v405_v11   ;;  %441 = vperm.xlu0 %686, %v403_v12  }
   0xb   :  { %639 = vmatpush3.bf16.msra.mxu0 %v690_v3  ;;  %676 = vmatpush3.bf16.msra.mxu1 %v690_v3 }
   0xc   :  { %640 = vmatprep.subr.bf16.mxu0 %v691_v4  ;;  %669 = vmatprep.subr.bf16.mxu1 %v691_v4 }
   0xf   :  { %641 = vmatpush3.bf16.msra.mxu0 %v691_v4  ;;  %677 = vmatpush3.bf16.msra.mxu1 %v691_v4 }
  0x10   :  { %642 = vmatprep.subr.bf16.mxu0 %v692_v7  ;;  %670 = vmatprep.subr.bf16.mxu1 %v692_v7 }
  0x13   :  { %643 = vmatpush3.bf16.msra.mxu0 %v692_v7  ;;  %678 = vmatpush3.bf16.msra.mxu1 %v692_v7 }
  0x14   :  { %644 = vmatprep.subr.bf16.mxu0 %v693_v8  ;;  %671 = vmatprep.subr.bf16.mxu1 %v693_v8 }
  0x15   :  { %8 = vsyncpa [#allocation4], 0  ;;  %v407_v14 = vld [vmem:[%s898_s2 + $0x28] sm:$0xff]  ;;  %v406_v15 = vld [vmem:[%s898_s2 + $0x20] sm:$0xff] }
  0x16   :  { %v695_v16 = vld [vmem:[%s897_s1] sm:$0xff]   ;;  %461 = vperm.xlu1 %687, %v407_v14   ;;  %456 = vperm.xlu0 %686, %v406_v15   ;;  %v409_v17 = vld [vmem:[%s898_s2 + $0x38] sm:$0xff]  ;;  %v408_v18 = vld [vmem:[%s898_s2 + $0x30] sm:$0xff] }
  0x17   :  { %645 = vmatpush3.bf16.msra.mxu0 %v693_v8  ;;  %679 = vmatpush3.bf16.msra.mxu1 %v693_v8  ;;  %v698_v19 = vld [vmem:[%s896_s0 + $0x8] sm:$0xff]   ;;  %v410_v22 = vld [vmem:[%s898_s2 + $0x40] sm:$0xff]  ;;  %v700_v23 = vld [vmem:[%s896_s0 + $0x10] sm:$0xff]  }
  0x18   :  { %646 = vmatprep.subr.bf16.mxu0 %v694_v13  ;;  %672 = vmatprep.subr.bf16.mxu1 %v694_v13  ;;  %v699_v20 = vld [vmem:[%s896_s0 + $0x28] sm:$0xff]   ;;  %v701_v24 = vld [vmem:[%s896_s0 + $0x30] sm:$0xff]   ;;  %v413_v25 = vld [vmem:[%s898_s2 + $0x58] sm:$0xff] }
  0x19   :  { %v411_v21 = vld [vmem:[%s898_s2 + $0x48] sm:$0xff]  ;;  %v412_v26 = vld [vmem:[%s898_s2 + $0x50] sm:$0xff]  ;;  %v702_v27 = vld [vmem:[%s896_s0 + $0x18] sm:$0xff]  }
  0x1a   :  { %471 = vperm.xlu1 %687, %v409_v17   ;;  %466 = vperm.xlu0 %686, %v408_v18   ;;  %v703_v28 = vld [vmem:[%s896_s0 + $0x38] sm:$0xff]   ;;  %v415_v29 = vld [vmem:[%s898_s2 + $0x68] sm:$0xff]  ;;  %v414_v30 = vld [vmem:[%s898_s2 + $0x60] sm:$0xff] }
  0x1b   :  { %647 = vmatpush3.bf16.msra.mxu0 %v694_v13  ;;  %680 = vmatpush3.bf16.msra.mxu1 %v694_v13  ;;  %v417_v31 = vld [vmem:[%s898_s2 + $0x78] sm:$0xff]  ;;  %v416_v32 = vld [vmem:[%s898_s2 + $0x70] sm:$0xff]  ;;  %v611_v42 = vld [vmem:[%s897_s1 + $0x8] sm:$0xff]  }
  0x1c   :  { %648 = vmatprep.subr.bf16.mxu0 %v695_v16  ;;  %673 = vmatprep.subr.bf16.mxu1 %v695_v16  ;;  %v615_v43 = vld [vmem:[%s897_s1 + $0x28] sm:$0xff]   ;;  %v580_v45 = vld [vmem:[%s897_s1] sm:$0xff]   ;;  %v585_v48 = vunpack.c.l.bf16 %v611_v42  ;;  %v586_v57 = vunpack.c.h.bf16 %v611_v42  ;;  %v871_v59 = vld [vmem:[%s897_s1 + $0x18] sm:$0xff]  }
  0x1d   :  { %v614_v46 = vld [vmem:[%s897_s1 + $0x20] sm:$0xff]   ;;  %v601_v49 = vunpack.c.l.bf16 %v615_v43  ;;  %v581_v50 = vunpack.c.l.bf16 %v580_v45  ;;  %v602_v58 = vunpack.c.h.bf16 %v615_v43  ;;  %v876_v60 = vld [vmem:[%s897_s1 + $0x38] sm:$0xff]   ;;  %v582_v63 = vunpack.c.h.bf16 %v580_v45  ;;  %v612_v6 = vld [vmem:[%s897_s1 + $0x10] sm:$0xff]  }
  0x1e   :  { %481 = vperm.xlu1 %687, %v411_v21   ;;  %476 = vperm.xlu0 %686, %v410_v22   ;;  %v597_v51 = vunpack.c.l.bf16 %v614_v46  ;;  %v598_v0 = vunpack.c.h.bf16 %v614_v46  ;;  %v616_v7 = vld [vmem:[%s897_s1 + $0x30] sm:$0xff]   ;;  %v593_v10 = vunpack.c.l.bf16 %v871_v59  ;;  %v609_v11 = vunpack.c.l.bf16 %v876_v60  ;;  %s727_s1 = smov [#allocation3]  }
  0x1f   :  { %649 = vmatpush3.bf16.msra.mxu0 %v695_v16  ;;  %681 = vmatpush3.bf16.msra.mxu1 %v695_v16  ;;  %v589_v18 = vunpack.c.l.bf16 %v612_v6  ;;  %v606_v42 = vunpack.c.h.bf16 %v616_v7  ;;  %s551_s9 = sshll.u32 %s727_s1, 4  ;;  %s552_s9 = int_to_ptr.vmem [resolvable:$true] %s551_s9 }
  0x20   :  { %s704_s10 = scalar_lea.vmem %s552_s9, 2048  ;;  %p709_p1 = scmp.lt.s32.totalorder %s552_s9, %s552_s9 }
  0x21   :  { %p705_p0 = scmp.ne.s32.totalorder %s552_s9, %s704_s10  ;;  %p710_p2 = scmp.lt.s32.totalorder %s704_s10, %s704_s10 }
  0x22   :  { %651 = vmatmul.mubr.bf16.vlgmr.msra.gmra.mxu0 %v698_v19  ;;  %659 = vmatmul.mubr.bf16.vlgmr.msra.gmra.mxu1 %v699_v20  ;;  %v605_v19 = vunpack.c.l.bf16 %v616_v7 }
  0x23   :  { %654 = vmatprep.mubr.bf16.mxu0 %v700_v23  ;;  %662 = vmatprep.mubr.bf16.mxu1 %v701_v24  ;;  %p711_p3 = por %p710_p2, %p709_p1 }
  0x24   :  { %491 = vperm.xlu1 %687, %v413_v25   ;;  %486 = vperm.xlu0 %686, %v412_v26  }
  0x25   :  { %p712_p4 = pnand %p711_p3, %p705_p0 }
  0x28   :  { %501 = vperm.xlu1 %687, %v415_v29   ;;  %496 = vperm.xlu0 %686, %v414_v30  }
  0x2a   :  { %655 = vmatmul.mubr.bf16.gmra.mxu0 %v702_v27  ;;  %663 = vmatmul.mubr.bf16.gmra.mxu1 %v703_v28  ;;  %v594_v27 = vunpack.c.h.bf16 %v871_v59  ;;  %v610_v28 = vunpack.c.h.bf16 %v876_v60 }
  0x2c   :  { %511 = vperm.xlu1 %687, %v417_v31   ;;  %506 = vperm.xlu0 %686, %v416_v32  }
  0x81   :  { %v437_v33 = vpop.permute.xlu0 %436  ;;  %v447_v34 = vpop.permute.xlu1 %446 }
  0x85   :  { %v846_v35 = vpop.permute.xlu0 %441  ;;  %v452_v36 = vpop.permute.xlu1 %451 }
  0x91   :  { %v848_v37 = vpop.permute.xlu0 %456  ;;  %v850_v38 = vpop.permute.xlu1 %461 }
  0x95   :  { %v852_v39 = vpop.permute.xlu0 %466  ;;  %v854_v40 = vpop.permute.xlu1 %471 }
  0x99   :  { %v477_v41 = vpop.permute.xlu0 %476  ;;  %v482_v44 = vpop.permute.xlu1 %481 }
  0x9f   :  { %v487_v47 = vpop.permute.xlu0 %486  ;;  %v492_v54 = vpop.permute.xlu1 %491 }
  0xa3   :  { %v497_v1 = vpop.permute.xlu0 %496  ;;  %v502_v20 = vpop.permute.xlu1 %501 }
  0xa7   :  { %v507_v29 = vpop.permute.xlu0 %506 }
  0xe2   :  { %v652_v52 = vpop.f32.mrf.mxu0  ;;  %v660_v53 = vpop.f32.mrf.mxu1 }
  0xe3   :  { %v369_v55 = vadd.f32 %v652_v52, %v585_v48  ;;  %v377_v56 = vadd.f32 %v660_v53, %v601_v49 }
  0xe4   :  { %v214_v61 = vpop.f32.mrf.mxu0  ;;  %v246_v62 = vpop.f32.mrf.mxu1 }
  0xe5   :  { %v516_v2 = vmul.f32 %v447_v34, %v369_v55  ;;  %v524_v3 = vmul.f32 %v487_v47, %v377_v56  ;;  %v367_v4 = vadd.f32 %v581_v50, %v214_v61  ;;  %v375_v5 = vadd.f32 %v597_v51, %v246_v62  ;;  %v512_v50 = vpop.permute.xlu1 %511 }
  0xe6   :  { %v653_v8 = vpop.f32.mrf.mxu0  ;;  %v661_v9 = vpop.f32.mrf.mxu1 }
  0xe7   :  { %532 = vst [vmem:[#allocation3 + $0x10] sm:$0xff] %v516_v2  ;;  %540 = vst [vmem:[#allocation3 + $0x50] sm:$0xff] %v524_v3  ;;  %v514_v12 = vmul.f32 %v437_v33, %v367_v4  ;;  %v522_v13 = vmul.f32 %v477_v41, %v375_v5  ;;  %v370_v14 = vadd.f32 %v653_v8, %v586_v57 }
  0xe8   :  { %v378_v15 = vadd.f32 %v661_v9, %v602_v58  ;;  %v217_v16 = vpop.f32.mrf.mxu0  ;;  %v249_v17 = vpop.f32.mrf.mxu1 }
  0xe9   :  { %530 = vst [vmem:[#allocation3] sm:$0xff] %v514_v12  ;;  %538 = vst [vmem:[#allocation3 + $0x40] sm:$0xff] %v522_v13  ;;  %v517_v21 = vmul.f32 %v452_v36, %v370_v14  ;;  %v368_v23 = vadd.f32 %v582_v63, %v217_v16  ;;  %v376_v24 = vadd.f32 %v598_v0, %v249_v17  ;;  %v590_v36 = vunpack.c.h.bf16 %v612_v6 }
  0xea   :  { %v525_v22 = vmul.f32 %v492_v54, %v378_v15  ;;  %v656_v25 = vpop.f32.mrf.mxu0  ;;  %v664_v26 = vpop.f32.mrf.mxu1 }
  0xeb   :  { %533 = vst [vmem:[#allocation3 + $0x18] sm:$0xff] %v517_v21  ;;  %v515_v30 = vmul.f32 %v846_v35, %v368_v23  ;;  %v523_v31 = vmul.f32 %v482_v44, %v376_v24  ;;  %v373_v32 = vadd.f32 %v656_v25, %v593_v10  ;;  %v381_v33 = vadd.f32 %v664_v26, %v609_v11 }
  0xec   :  { %541 = vst [vmem:[#allocation3 + $0x58] sm:$0xff] %v525_v22  ;;  %v230_v34 = vpop.f32.mrf.mxu0  ;;  %v262_v41 = vpop.f32.mrf.mxu1 }
  0xed   :  { %531 = vst [vmem:[#allocation3 + $0x8] sm:$0xff] %v515_v30  ;;  %539 = vst [vmem:[#allocation3 + $0x48] sm:$0xff] %v523_v31  ;;  %v520_v43 = vmul.f32 %v852_v39, %v373_v32  ;;  %v528_v45 = vmul.f32 %v507_v29, %v381_v33  ;;  %v371_v46 = vadd.f32 %v589_v18, %v230_v34 }
  0xee   :  { %v379_v47 = vadd.f32 %v605_v19, %v262_v41  ;;  %v657_v48 = vpop.f32.mrf.mxu0  ;;  %v665_v49 = vpop.f32.mrf.mxu1 }
  0xef   :  { %536 = vst [vmem:[#allocation3 + $0x30] sm:$0xff] %v520_v43  ;;  %544 = vst [vmem:[#allocation3 + $0x70] sm:$0xff] %v528_v45  ;;  %v518_v35 = vmul.f32 %v848_v37, %v371_v46  ;;  %v374_v51 = vadd.f32 %v657_v48, %v594_v27  ;;  %v382_v52 = vadd.f32 %v665_v49, %v610_v28 }
  0xf0   :  { %v526_v44 = vmul.f32 %v497_v1, %v379_v47  ;;  %v233_v53 = vpop.f32.mrf.mxu0  ;;  %v265_v54 = vpop.f32.mrf.mxu1 }
  0xf1   :  { %534 = vst [vmem:[#allocation3 + $0x20] sm:$0xff] %v518_v35  ;;  %v521_v39 = vmul.f32 %v854_v40, %v374_v51  ;;  %v529_v55 = vmul.f32 %v512_v50, %v382_v52  ;;  %v372_v56 = vadd.f32 %v590_v36, %v233_v53  ;;  %v380_v57 = vadd.f32 %v606_v42, %v265_v54 }
  0xf2   :  { %542 = vst [vmem:[#allocation3 + $0x60] sm:$0xff] %v526_v44 }
  0xf3   :  { %537 = vst [vmem:[#allocation3 + $0x38] sm:$0xff] %v521_v39  ;;  %545 = vst [vmem:[#allocation3 + $0x78] sm:$0xff] %v529_v55  ;;  %v519_v58 = vmul.f32 %v850_v38, %v372_v56  ;;  %v527_v37 = vmul.f32 %v502_v20, %v380_v57 }
  0xf5   :  { %535 = vst [vmem:[#allocation3 + $0x28] sm:$0xff] %v519_v58  ;;  %543 = vst [vmem:[#allocation3 + $0x68] sm:$0xff] %v527_v37 }
  0xf6   :  { %715 = shalt.err (!%p712_p4)
}
  0xf7   :  { %s728_s11 = smov 128   ;;  %s729_s12 = smov 8  }
  0xf8   :  { %557 = dma.vmem_to_hbm [thread:$0]  %s552_s9, 2048, %s899_s3, [#allocation4], %s728_s11, %s728_s11, %s729_s12  }
  0xf9   :  { %724 = dma.done.wait [#allocation4], 2048  }
  0xfa   :  { %725 = vsyncadd [#allocation4], 4294965248 }
  0xfb   :  { %561 = vsyncpa [#allocation4], 1 }

</bundles_post_ra>
